<compile_context>
chip_gen: v7x
topology: tpu7x:2x2x1
jax: 0.10.0
libtpu: 0.0.40
codegen_flags: <defaults>
</compile_context>

<pallas_src>
import jax
import jax.numpy as jnp
from jax.experimental import pallas as pl
from jax.experimental.pallas import tpu as pltpu


def mlp_kernel(x_ref,
               w0_ref, b0_ref,
               w1_ref, b1_ref,
               w2_ref, b2_ref,
               w3_ref, b3_ref,
               o_ref):
    # x_ref: (1, TM)  -- batch on the lane axis (lane-dense).
    # activations: (25, TM); weights: (out, in); biases: (out, 1).
    x = x_ref[...]                                          # (1, TM)
    h = jnp.tanh(w0_ref[...] * x + b0_ref[...])             # (25, TM)

    h = jnp.tanh(
        jnp.dot(w1_ref[...], h, preferred_element_type=jnp.float32)
        + b1_ref[...])                                      # (25, TM)
    h = jnp.tanh(
        jnp.dot(w2_ref[...], h, preferred_element_type=jnp.float32)
        + b2_ref[...])                                      # (25, TM)

    o_ref[...] = (
        jnp.dot(w3_ref[...], h, preferred_element_type=jnp.float32)
        + b3_ref[...])                                      # (25, TM)


def neural_net_forward(x, params, *, tm=None):
    """x: (N, 1) f32.  params: W0..W3 as (out,in), b0..b3 as (out,1).

    Returns (N, out_dim) f32, matching the PyTorch module's output layout.
    """
    N = x.shape[0]
    w0, b0 = params["W0"], params["b0"]
    w1, b1 = params["W1"], params["b1"]
    w2, b2 = params["W2"], params["b2"]
    w3, b3 = params["W3"], params["b3"]
    out_dim = w3.shape[0]

    # One big lane-dense batch tile per grid step: per-step overhead (~0.35 us)
    # dominates this tiny per-tile compute; VMEM is not a constraint (a
    # (25, 4096) f32 tile is ~400 KiB even double-buffered).
    if tm is None:
        tm = min(max(((N + 127) // 128) * 128, 128), 4096)
    n_pad = ((N + tm - 1) // tm) * tm

    # Transpose once at the boundary: batch goes onto the 128-lane axis.
    x_t = x.astype(jnp.float32).T                    # (1, N)
    if n_pad != N:
        x_t = jnp.pad(x_t, ((0, 0), (0, n_pad - N)))

    def full_spec(shape):
        return pl.BlockSpec(shape, lambda i: (0,) * len(shape))

    out_t = pl.pallas_call(
        mlp_kernel,
        out_shape=jax.ShapeDtypeStruct((out_dim, n_pad), jnp.float32),
        grid_spec=pltpu.PrefetchScalarGridSpec(
            num_scalar_prefetch=0,
            grid=(n_pad // tm,),
            in_specs=[
                pl.BlockSpec((1, tm), lambda i: (0, i)),   # x (lane-dense)
                full_spec(w0.shape), full_spec(b0.shape),
                full_spec(w1.shape), full_spec(b1.shape),
                full_spec(w2.shape), full_spec(b2.shape),
                full_spec(w3.shape), full_spec(b3.shape),
            ],
            out_specs=pl.BlockSpec((out_dim, tm), lambda i: (0, i)),
        ),
        compiler_params=pltpu.CompilerParams(
            dimension_semantics=("parallel",)),
    )(x_t, w0, b0, w1, b1, w2, b2, w3, b3)

    return out_t[:, :N].T                            # (N, out_dim)


def init_params(key, layers):
    """Deterministic init mimicking nn.Linear's U(-1/sqrt(in), 1/sqrt(in)).
    Weights in PyTorch layout (out_features, in_features); biases (out, 1)."""
    params = {}
    dims = list(zip(layers[:-1], layers[1:]))  # [(1,25),(25,25),(25,25),(25,25)]
    for idx, (fan_in, fan_out) in enumerate(dims):
        key, kw, kb = jax.random.split(key, 3)
        bound = 1.0 / jnp.sqrt(jnp.float32(fan_in))
        params[f"W{idx}"] = jax.random.uniform(
            kw, (fan_out, fan_in), jnp.float32, minval=-bound, maxval=bound)
        params[f"b{idx}"] = jax.random.uniform(
            kb, (fan_out, 1), jnp.float32, minval=-bound, maxval=bound)
    return params


def reference_forward(x, params):
    h = jnp.tanh(x @ params["W0"].T + params["b0"].T)
    h = jnp.tanh(h @ params["W1"].T + params["b1"].T)
    h = jnp.tanh(h @ params["W2"].T + params["b2"].T)
    return h @ params["W3"].T + params["b3"].T


if __name__ == "__main__":
    layers = [1, 25, 25, 25, 25]

    key = jax.random.PRNGKey(0)
    key_x, key_p = jax.random.split(key)

    params = init_params(key_p, layers)

    # Small batch of 1-D coordinates in [-a/2, a/2], like the original script.
    a = 2.0

    # Case 1: lane-aligned batch (single grid step, tm = N).
    N = 256
    x = jnp.linspace(-a / 2, a / 2, N, dtype=jnp.float32).reshape(N, 1)
    y = jax.block_until_ready(neural_net_forward(x, params))
    y_ref = reference_forward(x, params)
    assert y.shape == (N, layers[-1])
    assert jnp.allclose(y, y_ref, atol=1e-5, rtol=1e-5)

    # Case 2: arbitrary (non-multiple-of-128) batch, handled by padding.
    N2 = 200
    x2 = jnp.linspace(-a / 2, a / 2, N2, dtype=jnp.float32).reshape(N2, 1)
    y2 = jax.block_until_ready(neural_net_forward(x2, params))
    y2_ref = reference_forward(x2, params)
    assert y2.shape == (N2, layers[-1])
    assert jnp.allclose(y2, y2_ref, atol=1e-5, rtol=1e-5)

    print("KERNEL_OK")
</pallas_src>

<mosaic_0001>
module attributes {stable_mosaic.version = 11 : i64} {
  func.func @mlp_kernel(%arg0: i32, %arg1: memref<1x256xf32, #tpu.memory_space<vmem>>, %arg2: memref<25x1xf32, #tpu.memory_space<vmem>>, %arg3: memref<25x1xf32, #tpu.memory_space<vmem>>, %arg4: memref<25x25xf32, #tpu.memory_space<vmem>>, %arg5: memref<25x1xf32, #tpu.memory_space<vmem>>, %arg6: memref<25x25xf32, #tpu.memory_space<vmem>>, %arg7: memref<25x1xf32, #tpu.memory_space<vmem>>, %arg8: memref<25x25xf32, #tpu.memory_space<vmem>>, %arg9: memref<25x1xf32, #tpu.memory_space<vmem>>, %arg10: memref<25x256xf32, #tpu.memory_space<vmem>>) attributes {dimension_semantics = [#tpu.dimension_semantics<parallel>], iteration_bounds = array<i64: 1>, scalar_prefetch = 0 : i64, scratch_operands = 0 : i64, tpu.core_type = #tpu.core_type<tc>, window_params = [{transform_indices = @transform_0, window_bounds = array<i64: 1, 256>}, {pipeline_mode = #tpu.pipeline_mode<synchronous>, transform_indices = @transform_1, window_bounds = array<i64: 25, 1>}, {pipeline_mode = #tpu.pipeline_mode<synchronous>, transform_indices = @transform_2, window_bounds = array<i64: 25, 1>}, {pipeline_mode = #tpu.pipeline_mode<synchronous>, transform_indices = @transform_3, window_bounds = array<i64: 25, 25>}, {pipeline_mode = #tpu.pipeline_mode<synchronous>, transform_indices = @transform_4, window_bounds = array<i64: 25, 1>}, {pipeline_mode = #tpu.pipeline_mode<synchronous>, transform_indices = @transform_5, window_bounds = array<i64: 25, 25>}, {pipeline_mode = #tpu.pipeline_mode<synchronous>, transform_indices = @transform_6, window_bounds = array<i64: 25, 1>}, {pipeline_mode = #tpu.pipeline_mode<synchronous>, transform_indices = @transform_7, window_bounds = array<i64: 25, 25>}, {pipeline_mode = #tpu.pipeline_mode<synchronous>, transform_indices = @transform_8, window_bounds = array<i64: 25, 1>}, {transform_indices = @transform_9, window_bounds = array<i64: 25, 256>}]} {
    %c0 = arith.constant 0 : index
    %c0_0 = arith.constant 0 : index
    %0 = vector.load %arg1[%c0, %c0_0] : memref<1x256xf32, #tpu.memory_space<vmem>>, vector<1x256xf32>
    %c0_1 = arith.constant 0 : index
    %c0_2 = arith.constant 0 : index
    %1 = vector.load %arg2[%c0_1, %c0_2] : memref<25x1xf32, #tpu.memory_space<vmem>>, vector<25x1xf32>
    %2 = vector.broadcast %1 : vector<25x1xf32> to vector<25x256xf32>
    %3 = vector.broadcast %0 : vector<1x256xf32> to vector<25x256xf32>
    %4 = arith.mulf %2, %3 : vector<25x256xf32>
    %c0_3 = arith.constant 0 : index
    %c0_4 = arith.constant 0 : index
    %5 = vector.load %arg3[%c0_3, %c0_4] : memref<25x1xf32, #tpu.memory_space<vmem>>, vector<25x1xf32>
    %6 = vector.broadcast %5 : vector<25x1xf32> to vector<25x256xf32>
    %7 = arith.addf %4, %6 : vector<25x256xf32>
    %8 = math.tanh %7 : vector<25x256xf32>
    %c0_5 = arith.constant 0 : index
    %c0_6 = arith.constant 0 : index
    %9 = vector.load %arg4[%c0_5, %c0_6] : memref<25x25xf32, #tpu.memory_space<vmem>>, vector<25x25xf32>
    %cst = arith.constant dense<0.000000e+00> : vector<25x256xf32>
    %10 = tpu.matmul %9, %8, %cst {dimension_numbers = #tpu.dot_dimension_numbers<[1], [0], [0], [1], [0, 0, 1, 1], [], []>} : vector<25x25xf32>, vector<25x256xf32>, vector<25x256xf32> -> vector<25x256xf32>
    %c0_7 = arith.constant 0 : index
    %c0_8 = arith.constant 0 : index
    %11 = vector.load %arg5[%c0_7, %c0_8] : memref<25x1xf32, #tpu.memory_space<vmem>>, vector<25x1xf32>
    %12 = vector.broadcast %11 : vector<25x1xf32> to vector<25x256xf32>
    %13 = arith.addf %10, %12 : vector<25x256xf32>
    %14 = math.tanh %13 : vector<25x256xf32>
    %c0_9 = arith.constant 0 : index
    %c0_10 = arith.constant 0 : index
    %15 = vector.load %arg6[%c0_9, %c0_10] : memref<25x25xf32, #tpu.memory_space<vmem>>, vector<25x25xf32>
    %cst_11 = arith.constant dense<0.000000e+00> : vector<25x256xf32>
    %16 = tpu.matmul %15, %14, %cst_11 {dimension_numbers = #tpu.dot_dimension_numbers<[1], [0], [0], [1], [0, 0, 1, 1], [], []>} : vector<25x25xf32>, vector<25x256xf32>, vector<25x256xf32> -> vector<25x256xf32>
    %c0_12 = arith.constant 0 : index
    %c0_13 = arith.constant 0 : index
    %17 = vector.load %arg7[%c0_12, %c0_13] : memref<25x1xf32, #tpu.memory_space<vmem>>, vector<25x1xf32>
    %18 = vector.broadcast %17 : vector<25x1xf32> to vector<25x256xf32>
    %19 = arith.addf %16, %18 : vector<25x256xf32>
    %20 = math.tanh %19 : vector<25x256xf32>
    %c0_14 = arith.constant 0 : index
    %c0_15 = arith.constant 0 : index
    %21 = vector.load %arg8[%c0_14, %c0_15] : memref<25x25xf32, #tpu.memory_space<vmem>>, vector<25x25xf32>
    %cst_16 = arith.constant dense<0.000000e+00> : vector<25x256xf32>
    %22 = tpu.matmul %21, %20, %cst_16 {dimension_numbers = #tpu.dot_dimension_numbers<[1], [0], [0], [1], [0, 0, 1, 1], [], []>} : vector<25x25xf32>, vector<25x256xf32>, vector<25x256xf32> -> vector<25x256xf32>
    %c0_17 = arith.constant 0 : index
    %c0_18 = arith.constant 0 : index
    %23 = vector.load %arg9[%c0_17, %c0_18] : memref<25x1xf32, #tpu.memory_space<vmem>>, vector<25x1xf32>
    %24 = vector.broadcast %23 : vector<25x1xf32> to vector<25x256xf32>
    %25 = arith.addf %22, %24 : vector<25x256xf32>
    %c0_19 = arith.constant 0 : index
    %c0_20 = arith.constant 0 : index
    %26 = vector.load %arg10[%c0_19, %c0_20] : memref<25x256xf32, #tpu.memory_space<vmem>>, vector<25x256xf32>
    tpu.vector_store %arg10[%c0_19, %c0_20], %25 {strides = array<i32>} : memref<25x256xf32, #tpu.memory_space<vmem>>, vector<25x256xf32>,
    return
  }
  func.func @transform_0(%arg0: i32) -> (i32, i32) {
    %c0_i32 = arith.constant 0 : i32
    %c0_i32_0 = arith.constant 0 : i32
    return %c0_i32, %arg0 : i32, i32
  }
  func.func @transform_1(%arg0: i32) -> (i32, i32) {
    %c0_i32 = arith.constant 0 : i32
    %c0_i32_0 = arith.constant 0 : i32
    %c0_i32_1 = arith.constant 0 : i32
    return %c0_i32, %c0_i32_0 : i32, i32
  }
  func.func @transform_2(%arg0: i32) -> (i32, i32) {
    %c0_i32 = arith.constant 0 : i32
    %c0_i32_0 = arith.constant 0 : i32
    %c0_i32_1 = arith.constant 0 : i32
    return %c0_i32, %c0_i32_0 : i32, i32
  }
  func.func @transform_3(%arg0: i32) -> (i32, i32) {
    %c0_i32 = arith.constant 0 : i32
    %c0_i32_0 = arith.constant 0 : i32
    %c0_i32_1 = arith.constant 0 : i32
    return %c0_i32, %c0_i32_0 : i32, i32
  }
  func.func @transform_4(%arg0: i32) -> (i32, i32) {
    %c0_i32 = arith.constant 0 : i32
    %c0_i32_0 = arith.constant 0 : i32
    %c0_i32_1 = arith.constant 0 : i32
    return %c0_i32, %c0_i32_0 : i32, i32
  }
  func.func @transform_5(%arg0: i32) -> (i32, i32) {
    %c0_i32 = arith.constant 0 : i32
    %c0_i32_0 = arith.constant 0 : i32
    %c0_i32_1 = arith.constant 0 : i32
    return %c0_i32, %c0_i32_0 : i32, i32
  }
  func.func @transform_6(%arg0: i32) -> (i32, i32) {
    %c0_i32 = arith.constant 0 : i32
    %c0_i32_0 = arith.constant 0 : i32
    %c0_i32_1 = arith.constant 0 : i32
    return %c0_i32, %c0_i32_0 : i32, i32
  }
  func.func @transform_7(%arg0: i32) -> (i32, i32) {
    %c0_i32 = arith.constant 0 : i32
    %c0_i32_0 = arith.constant 0 : i32
    %c0_i32_1 = arith.constant 0 : i32
    return %c0_i32, %c0_i32_0 : i32, i32
  }
  func.func @transform_8(%arg0: i32) -> (i32, i32) {
    %c0_i32 = arith.constant 0 : i32
    %c0_i32_0 = arith.constant 0 : i32
    %c0_i32_1 = arith.constant 0 : i32
    return %c0_i32, %c0_i32_0 : i32, i32
  }
  func.func @transform_9(%arg0: i32) -> (i32, i32) {
    %c0_i32 = arith.constant 0 : i32
    %c0_i32_0 = arith.constant 0 : i32
    return %c0_i32, %arg0 : i32, i32
  }
}

</mosaic_0001>

<bundles_post_ra>
// kernel: tpu_custom_call.1
= control target key start
LH: loop header
LB: loop body
LE: loop exit
PB: predicated region body
PF: predicated region fallthrough
CT: control target
= control target key end

     0   :  { %v696_v2 = vmov 0   ;;  %s907_s0 = inlined_call_operand.vmem [shape: f32[1,256], index: 0, kind: input, shape index: {}]   ;;  %s908_s1 = inlined_call_operand.vmem [shape: f32[25,1], index: 1, kind: input, shape index: {}]   ;;  %s909_s2 = inlined_call_operand.vmem [shape: f32[25,1], index: 2, kind: input, shape index: {}]   ;;  %s910_s3 = inlined_call_operand.vmem [shape: f32[25,25], index: 3, kind: input, shape index: {}]   ;;  %s911_s4 = inlined_call_operand.vmem [shape: f32[25,1], index: 4, kind: input, shape index: {}]   ;;  %s912_s5 = inlined_call_operand.vmem [shape: f32[25,25], index: 5, kind: input, shape index: {}]   ;;  %s913_s6 = inlined_call_operand.vmem [shape: f32[25,1], index: 6, kind: input, shape index: {}]   ;;  %s914_s7 = inlined_call_operand.vmem [shape: f32[25,25], index: 7, kind: input, shape index: {}]   ;;  %s915_s8 = inlined_call_operand.vmem [shape: f32[25,1], index: 8, kind: input, shape index: {}]   ;;  %s916_s9 = inlined_call_operand.hbm [shape: f32[25,256], index: 9, kind: output, shape index: {}]  }
   0x1   :  { %v77_v0 = vld [vmem:[%s909_s2] sm:$0xff]  ;;  %623 = vset.pattern.permute.xlu1 %v696_v2  ;;  %622 = vset.pattern.permute.xlu0 %v696_v2  ;;  %v78_v3 = vld [vmem:[%s909_s2 + $0x8] sm:$0xff]  ;;  %v37_v5 = vld [vmem:[%s908_s1 + $0x18] sm:$0x1] }
   0x2   :  { %v34_v1 = vld [vmem:[%s908_s1] sm:$0xff]  ;;  %83 = vperm.xlu1 %623, %v77_v0   ;;  %v35_v4 = vld [vmem:[%s908_s1 + $0x8] sm:$0xff]  ;;  %v36_v6 = vld [vmem:[%s908_s1 + $0x10] sm:$0xff] }
   0x3   :  { %40 = vperm.xlu0 %622, %v34_v1  }
   0x6   :  { %88 = vperm.xlu1 %623, %v78_v3  }
   0x7   :  { %45 = vperm.xlu0 %622, %v35_v4  }
   0x8   :  { %14 = vsyncpa [#allocation3], 0  ;;  %v80_v7 = vld [vmem:[%s909_s2 + $0x18] sm:$0x1]  ;;  %v79_v8 = vld [vmem:[%s909_s2 + $0x10] sm:$0xff]  ;;  %v697_v21 = vmov 0.0   ;;  %v59_v22 = vlaneseq }
   0x9   :  { %v122_v9 = vld [vmem:[%s911_s4 + $0x8] sm:$0xff]  ;;  %v121_v10 = vld [vmem:[%s911_s4] sm:$0xff]  ;;  %v124_v11 = vld [vmem:[%s911_s4 + $0x18] sm:$0x1]  ;;  %229 = vmatprep.mubr.f32.mxu0 %v697_v21  ;;  %241 = vmatprep.mubr.f32.mxu1 %v697_v21  ;;  %vm158_vm0 = vcmask 1040384   ;;  %vm698_vm1 = vmmov 1  }
   0xa   :  { %55 = vperm.xlu1 %623, %v37_v5   ;;  %v123_v12 = vld [vmem:[%s911_s4 + $0x10] sm:$0xff]  ;;  %v267_v13 = vld [vmem:[%s913_s6 + $0x8] sm:$0xff]  ;;  %v266_v14 = vld [vmem:[%s913_s6] sm:$0xff]  ;;  %v60_v23 = vshrl.u32 %v59_v22, 7  ;;  %vm145_vm3 = vcmask 203776  }
   0xb   :  { %50 = vperm.xlu0 %622, %v36_v6   ;;  %v269_v15 = vld [vmem:[%s913_s6 + $0x18] sm:$0x1]  ;;  %v268_v16 = vld [vmem:[%s913_s6 + $0x10] sm:$0xff]  ;;  %v410_v17 = vld [vmem:[%s915_s8 + $0x8] sm:$0xff] }
   0xc   :  { %v409_v18 = vld [vmem:[%s915_s8] sm:$0xff]  ;;  %v412_v19 = vld [vmem:[%s915_s8 + $0x18] sm:$0x1]  ;;  %v411_v20 = vld [vmem:[%s915_s8 + $0x10] sm:$0xff]  ;;  %v61_v24 = vsub.s32 0, %v60_v23  ;;  %v65_v25 = vsub.s32 1, %v60_v23 }
   0xd   :  { %v33_v26 = vld [vmem:[%s907_s0] sm:$0x3]  ;;  %vm817_vm2 = vmpackc.low %vm158_vm0, %vm698_vm1  ;;  %v119_v3 = vld [vmem:[%s910_s3 + $0x10] sm:$0xff] }
   0xe   :  { %98 = vperm.xlu1 %623, %v80_v7   ;;  %v62_v27 = vrot.slane %v33_v26, %v61_v24  ;;  %v66_v28 = vrot.slane %v33_v26, %v65_v25  ;;  %v117_v2 = vld [vmem:[%s910_s3] sm:$0xff]  ;;  %v118_v4 = vld [vmem:[%s910_s3 + $0x8] sm:$0xff]  ;;  %v120_v5 = vld [vmem:[%s910_s3 + $0x18] sm:$0x1] }
   0xf   :  { %93 = vperm.xlu0 %622, %v79_v8   ;;  %v407_v63 = vld [vmem:[%s914_s7 + $0x10] sm:$0xff] }
  0x12   :  { %132 = vperm.xlu1 %623, %v122_v9  }
  0x13   :  { %127 = vperm.xlu0 %622, %v121_v10  }
  0x16   :  { %142 = vperm.xlu1 %623, %v124_v11  }
  0x17   :  { %137 = vperm.xlu0 %622, %v123_v12  }
  0x1a   :  { %277 = vperm.xlu1 %623, %v267_v13  }
  0x1b   :  { %272 = vperm.xlu0 %622, %v266_v14  }
  0x1e   :  { %287 = vperm.xlu1 %623, %v269_v15  }
  0x1f   :  { %282 = vperm.xlu0 %622, %v268_v16  }
  0x22   :  { %420 = vperm.xlu1 %623, %v410_v17  }
  0x23   :  { %415 = vperm.xlu0 %622, %v409_v18  }
  0x26   :  { %430 = vperm.xlu1 %623, %v412_v19  }
  0x27   :  { %425 = vperm.xlu0 %622, %v411_v20  }
  0x81   :  { %v84_v29 = vpop.permute.xlu1 %83 }
  0x82   :  { %v41_v30 = vpop.permute.xlu0 %40 }
  0x83   :  { %v69_v31 = vmul.f32 %v62_v27, %v41_v30  ;;  %v70_v32 = vmul.f32 %v66_v28, %v41_v30 }
  0x85   :  { %v101_v33 = vadd.f32 %v84_v29, %v69_v31  ;;  %v102_v34 = vadd.f32 %v84_v29, %v70_v32  ;;  %v89_v35 = vpop.permute.xlu1 %88 }
  0x86   :  { %v46_v36 = vpop.permute.xlu0 %45 }
  0x87   :  { %v71_v37 = vmul.f32 %v62_v27, %v46_v36  ;;  %v72_v38 = vmul.f32 %v66_v28, %v46_v36  ;;  %624 = vtanh.f32 %v101_v33 }
  0x88   :  { %626 = vtanh.f32 %v102_v34 }
  0x89   :  { %v103_v39 = vadd.f32 %v89_v35, %v71_v37  ;;  %v104_v40 = vadd.f32 %v89_v35, %v72_v38  ;;  %v56_v41 = vpop.permute.xlu1 %55 }
  0x8a   :  { %v51_v42 = vpop.permute.xlu0 %50  ;;  %v75_v43 = vmul.f32 %v62_v27, %v56_v41  ;;  %v76_v44 = vmul.f32 %v66_v28, %v56_v41  ;;  %v264_v41 = vld [vmem:[%s912_s5 + $0x10] sm:$0xff] }
  0x8b   :  { %628 = vtanh.f32 %v103_v39  ;;  %v73_v45 = vmul.f32 %v62_v27, %v51_v42  ;;  %v74_v46 = vmul.f32 %v66_v28, %v51_v42  ;;  %v262_v39 = vld [vmem:[%s912_s5] sm:$0xff]  ;;  %v265_v42 = vld [vmem:[%s912_s5 + $0x18] sm:$0x1] }
  0x8c   :  { %630 = vtanh.f32 %v104_v40  ;;  %v263_v40 = vld [vmem:[%s912_s5 + $0x8] sm:$0xff] }
  0x8d   :  { %v99_v47 = vpop.permute.xlu1 %98 }
  0x8e   :  { %v94_v48 = vpop.permute.xlu0 %93  ;;  %v107_v49 = vadd.f32 %v99_v47, %v75_v43  ;;  %v108_v50 = vadd.f32 %v99_v47, %v76_v44 }
  0x8f   :  { %v105_v51 = vadd.f32 %v94_v48, %v73_v45  ;;  %v106_v52 = vadd.f32 %v94_v48, %v74_v46 }
  0x90   :  { %632 = vtanh.f32 %v107_v49 }
  0x91   :  { %634 = vtanh.f32 %v108_v50  ;;  %v625_v53 = vpop.eup %624  ;;  %v133_v7 = vpop.permute.xlu1 %132 }
  0x92   :  { %636 = vtanh.f32 %v105_v51  ;;  %v627_v54 = vpop.eup %626  ;;  %v128_v6 = vpop.permute.xlu0 %127 }
  0x93   :  { %638 = vtanh.f32 %v106_v52 }
  0x95   :  { %v629_v55 = vpop.eup %628  ;;  %v143_v17 = vpop.permute.xlu1 %142 }
  0x96   :  { %v631_v56 = vpop.eup %630  ;;  %v584_v57 = vpack.c.bf16 %v629_v55, %v625_v53  ;;  %v138_v8 = vpop.permute.xlu0 %137 }
  0x97   :  { %v582_v58 = vpack.c.bf16 %v631_v56, %v627_v54 }
  0x99   :  { %583 = vmatprep.subr.bf16.mxu0 %v582_v58  ;;  %612 = vmatprep.subr.bf16.mxu1 %v582_v58  ;;  %v278_v48 = vpop.permute.xlu1 %277 }
  0x9a   :  { %585 = vmatpush1.bf16.msra.mxu0 %v584_v57  ;;  %614 = vmatpush1.bf16.msra.mxu1 %v584_v57  ;;  %v633_v59 = vpop.eup %632  ;;  %v273_v43 = vpop.permute.xlu0 %272 }
  0x9b   :  { %v635_v60 = vpop.eup %634 }
  0x9c   :  { %v637_v61 = vpop.eup %636 }
  0x9d   :  { %v639_v62 = vpop.eup %638  ;;  %v589_v0 = vpack.c.bf16 %v633_v59, %v637_v61  ;;  %v288_v58 = vpop.permute.xlu1 %287 }
  0x9e   :  { %v586_v1 = vpack.c.bf16 %v635_v60, %v639_v62  ;;  %v283_v53 = vpop.permute.xlu0 %282 }
  0xa0   :  { %588 = vmatprep.subr.msk.bf16.mxu0 %vm817_vm2, %v586_v1  ;;  %613 = vmatprep.subr.msk.bf16.mxu1 %vm817_vm2, %v586_v1 }
  0xa1   :  { %591 = vmatpush1.bf16.msk.msra.mxu0 %vm817_vm2, %v589_v0  ;;  %615 = vmatpush1.bf16.msk.msra.mxu1 %vm817_vm2, %v589_v0 }
  0xa4   :  { %566 = vmatmul.mubr.msk.f32.vlgmr.msra.gmra.mrb[0].mxu0 %vm145_vm3, %v117_v2  ;;  %568 = vmatmul.mubr.msk.f32.vlgmr.msra.gmra.mrb[0].mxu1 %vm145_vm3, %v119_v3 }
  0xa5   :  { %235 = vmatprep.mubr.f32.mxu0 %v697_v21  ;;  %247 = vmatprep.mubr.f32.mxu1 %v697_v21 }
  0xa8   :  { %567 = vmatmul.mubr.msk.f32.gmra.mrb[2].mxu0 %vm145_vm3, %v118_v4  ;;  %569 = vmatmul.mubr.msk.f32.gmra.mrb[2].mxu1 %vm145_vm3, %v120_v5 }
  0xa9   :  { %372 = vmatprep.mubr.f32.mxu1 %v697_v21  ;;  %515 = vmatprep.mubr.f32.mxu0 %v697_v21 }
 0x177   :  { %v231_v9 = vpop.f32.mrb[0].mxu0  ;;  %v243_v10 = vpop.f32.mrb[0].mxu1 }
 0x178   :  { %v232_v11 = vadd.f32 %v231_v9, %v128_v6  ;;  %v244_v12 = vadd.f32 %v243_v10, %v138_v8  ;;  %v233_v13 = vpop.f32.mrb[1].mxu0  ;;  %v245_v14 = vpop.f32.mrb[1].mxu1 }
 0x179   :  { %v234_v15 = vadd.f32 %v233_v13, %v128_v6  ;;  %v246_v16 = vadd.f32 %v245_v14, %v138_v8  ;;  %v406_v13 = vld [vmem:[%s914_s7 + $0x8] sm:$0xff]  ;;  %v408_v14 = vld [vmem:[%s914_s7 + $0x18] sm:$0x1] }
 0x17a   :  { %640 = vtanh.f32 %v232_v11 }
 0x17b   :  { %642 = vtanh.f32 %v244_v12  ;;  %v237_v18 = vpop.f32.mrb[2].mxu0  ;;  %v249_v19 = vpop.f32.mrb[2].mxu1  ;;  %v405_v12 = vld [vmem:[%s914_s7] sm:$0xff]  ;;  %s699_s7 = smov [#allocation2]  }
 0x17c   :  { %644 = vtanh.f32 %v234_v15  ;;  %v238_v20 = vadd.f32 %v237_v18, %v133_v7  ;;  %v250_v22 = vadd.f32 %v249_v19, %v143_v17  ;;  %v239_v23 = vpop.f32.mrb[3].mxu0  ;;  %v251_v24 = vpop.f32.mrb[3].mxu1  ;;  %s553_s22 = sshll.u32 %s699_s7, 4  ;;  %s554_s22 = int_to_ptr.vmem [resolvable:$true] %s553_s22 }
 0x17d   :  { %646 = vtanh.f32 %v246_v16  ;;  %v240_v25 = vadd.f32 %v239_v23, %v133_v7  ;;  %v252_v26 = vadd.f32 %v251_v24, %v143_v17  ;;  %v416_v15 = vpop.permute.xlu0 %415  ;;  %s672_s23 = scalar_lea.vmem %s554_s22, 1024  ;;  %p677_p1 = scmp.lt.s32.totalorder %s554_s22, %s554_s22 }
 0x17e   :  { %648 = vtanh.f32 %v238_v20  ;;  %v421_v20 = vpop.permute.xlu1 %420  ;;  %p673_p0 = scmp.ne.s32.totalorder %s554_s22, %s672_s23  ;;  %p678_p2 = scmp.lt.s32.totalorder %s672_s23, %s672_s23 }
 0x17f   :  { %650 = vtanh.f32 %v250_v22 }
 0x180   :  { %652 = vtanh.f32 %v240_v25  ;;  %p679_p3 = por %p678_p2, %p677_p1 }
 0x181   :  { %654 = vtanh.f32 %v252_v26 }
 0x182   :  { %p680_p4 = pnand %p679_p3, %p673_p0 }
 0x184   :  { %v641_v27 = vpop.eup %640 }
 0x185   :  { %v643_v28 = vpop.eup %642 }
 0x186   :  { %v645_v29 = vpop.eup %644 }
 0x187   :  { %v647_v30 = vpop.eup %646 }
 0x188   :  { %v649_v31 = vpop.eup %648 }
 0x189   :  { %v651_v32 = vpop.eup %650  ;;  %v594_v33 = vpack.c.bf16 %v649_v31, %v641_v27 }
 0x18a   :  { %v653_v34 = vpop.eup %652  ;;  %v599_v35 = vpack.c.bf16 %v651_v32, %v643_v28 }
 0x18b   :  { %v655_v36 = vpop.eup %654  ;;  %v592_v37 = vpack.c.bf16 %v653_v34, %v645_v29 }
 0x18c   :  { %v596_v38 = vpack.c.bf16 %v655_v36, %v647_v30  ;;  %v431_v30 = vpop.permute.xlu1 %430 }
 0x18d   :  { %593 = vmatprep.subr.bf16.mxu1 %v592_v37 }
 0x18e   :  { %595 = vmatpush1.bf16.msra.mxu1 %v594_v33 }
 0x18f   :  { %598 = vmatprep.subr.msk.bf16.mxu1 %vm817_vm2, %v596_v38 }
 0x192   :  { %601 = vmatpush1.bf16.msk.msra.mxu1 %vm817_vm2, %v599_v35 }
 0x195   :  { %572 = vmatmul.mubr.msk.f32.vlgmr.msra.gmra.mrb[4].mxu1 %vm145_vm3, %v262_v39 }
 0x196   :  { %378 = vmatprep.mubr.f32.mxu1 %v697_v21 }
 0x199   :  { %573 = vmatmul.mubr.msk.f32.gmra.mrb[6].mxu1 %vm145_vm3, %v263_v40 }
 0x19a   :  { %384 = vmatprep.mubr.f32.mxu1 %v697_v21 }
 0x19d   :  { %574 = vmatmul.mubr.msk.f32.gmra.mrb[8].mxu1 %vm145_vm3, %v264_v41 }
 0x19e   :  { %390 = vmatprep.mubr.f32.mxu1 %v697_v21 }
 0x1a1   :  { %575 = vmatmul.mubr.msk.f32.gmra.mrb[10].mxu1 %vm145_vm3, %v265_v42 }
 0x268   :  { %v374_v44 = vpop.f32.mrb[4].mxu1 }
 0x269   :  { %v375_v45 = vadd.f32 %v374_v44, %v273_v43  ;;  %v376_v46 = vpop.f32.mrb[5].mxu1 }
 0x26a   :  { %v377_v47 = vadd.f32 %v376_v46, %v273_v43 }
 0x26b   :  { %656 = vtanh.f32 %v375_v45 }
 0x26c   :  { %v380_v49 = vpop.f32.mrb[6].mxu1  ;;  %658 = vtanh.f32 %v377_v47 }
 0x26d   :  { %v381_v50 = vadd.f32 %v380_v49, %v278_v48  ;;  %v382_v51 = vpop.f32.mrb[7].mxu1 }
 0x26e   :  { %v383_v52 = vadd.f32 %v382_v51, %v278_v48 }
 0x26f   :  { %660 = vtanh.f32 %v381_v50 }
 0x270   :  { %662 = vtanh.f32 %v383_v52  ;;  %v386_v54 = vpop.f32.mrb[8].mxu1 }
 0x271   :  { %v387_v55 = vadd.f32 %v386_v54, %v283_v53  ;;  %v388_v56 = vpop.f32.mrb[9].mxu1 }
 0x272   :  { %v389_v57 = vadd.f32 %v388_v56, %v283_v53 }
 0x273   :  { %664 = vtanh.f32 %v387_v55 }
 0x274   :  { %v392_v59 = vpop.f32.mrb[10].mxu1  ;;  %666 = vtanh.f32 %v389_v57 }
 0x275   :  { %v393_v60 = vadd.f32 %v392_v59, %v288_v58  ;;  %v394_v61 = vpop.f32.mrb[11].mxu1  ;;  %v657_v0 = vpop.eup %656 }
 0x276   :  { %v395_v62 = vadd.f32 %v394_v61, %v288_v58  ;;  %v659_v1 = vpop.eup %658 }
 0x277   :  { %668 = vtanh.f32 %v393_v60 }
 0x278   :  { %670 = vtanh.f32 %v395_v62 }
 0x279   :  { %v661_v2 = vpop.eup %660 }
 0x27a   :  { %v663_v3 = vpop.eup %662  ;;  %v604_v4 = vpack.c.bf16 %v661_v2, %v657_v0 }
 0x27b   :  { %v602_v5 = vpack.c.bf16 %v663_v3, %v659_v1 }
 0x27d   :  { %603 = vmatprep.subr.bf16.mxu0 %v602_v5  ;;  %v665_v6 = vpop.eup %664 }
 0x27e   :  { %605 = vmatpush1.bf16.msra.mxu0 %v604_v4  ;;  %v667_v7 = vpop.eup %666 }
 0x281   :  { %v669_v8 = vpop.eup %668 }
 0x282   :  { %v671_v9 = vpop.eup %670  ;;  %v609_v10 = vpack.c.bf16 %v669_v8, %v665_v6 }
 0x283   :  { %v606_v11 = vpack.c.bf16 %v671_v9, %v667_v7 }
 0x285   :  { %608 = vmatprep.subr.msk.bf16.mxu0 %vm817_vm2, %v606_v11 }
 0x286   :  { %611 = vmatpush1.bf16.msk.msra.mxu0 %vm817_vm2, %v609_v10 }
 0x289   :  { %578 = vmatmul.mubr.msk.f32.vlgmr.msra.gmra.mrb[4].mxu0 %vm145_vm3, %v405_v12 }
 0x28a   :  { %521 = vmatprep.mubr.f32.mxu0 %v697_v21 }
 0x28d   :  { %579 = vmatmul.mubr.msk.f32.gmra.mrb[6].mxu0 %vm145_vm3, %v406_v13 }
 0x28e   :  { %527 = vmatprep.mubr.f32.mxu0 %v697_v21 }
 0x291   :  { %580 = vmatmul.mubr.msk.f32.gmra.mrb[8].mxu0 %vm145_vm3, %v407_v63 }
 0x292   :  { %533 = vmatprep.mubr.f32.mxu0 %v697_v21  ;;  %v426_v21 = vpop.permute.xlu0 %425 }
 0x295   :  { %581 = vmatmul.mubr.msk.f32.gmra.mrb[10].mxu0 %vm145_vm3, %v408_v14 }
 0x35c   :  { %v517_v16 = vpop.f32.mrb[4].mxu0 }
 0x35d   :  { %v518_v17 = vadd.f32 %v517_v16, %v416_v15  ;;  %v519_v18 = vpop.f32.mrb[5].mxu0 }
 0x35e   :  { %v520_v19 = vadd.f32 %v519_v18, %v416_v15 }
 0x35f   :  { %540 = vst [vmem:[#allocation2] sm:$0xff] %v518_v17 }
 0x360   :  { %541 = vst [vmem:[#allocation2 + $0x8] sm:$0xff] %v520_v19  ;;  %v523_v22 = vpop.f32.mrb[6].mxu0 }
 0x361   :  { %v524_v23 = vadd.f32 %v523_v22, %v421_v20  ;;  %v525_v24 = vpop.f32.mrb[7].mxu0 }
 0x362   :  { %v526_v25 = vadd.f32 %v525_v24, %v421_v20 }
 0x363   :  { %542 = vst [vmem:[#allocation2 + $0x10] sm:$0xff] %v524_v23 }
 0x364   :  { %543 = vst [vmem:[#allocation2 + $0x18] sm:$0xff] %v526_v25  ;;  %v529_v26 = vpop.f32.mrb[8].mxu0 }
 0x365   :  { %v530_v27 = vadd.f32 %v529_v26, %v426_v21  ;;  %v531_v28 = vpop.f32.mrb[9].mxu0 }
 0x366   :  { %v532_v29 = vadd.f32 %v531_v28, %v426_v21 }
 0x367   :  { %544 = vst [vmem:[#allocation2 + $0x20] sm:$0xff] %v530_v27 }
 0x368   :  { %545 = vst [vmem:[#allocation2 + $0x28] sm:$0xff] %v532_v29  ;;  %v535_v31 = vpop.f32.mrb[10].mxu0 }
 0x369   :  { %v536_v32 = vadd.f32 %v535_v31, %v431_v30  ;;  %v537_v33 = vpop.f32.mrb[11].mxu0 }
 0x36a   :  { %v538_v34 = vadd.f32 %v537_v33, %v431_v30 }
 0x36b   :  { %546 = vst [vmem:[#allocation2 + $0x30] sm:$0x1] %v536_v32 }
 0x36c   :  { %547 = vst [vmem:[#allocation2 + $0x38] sm:$0x1] %v538_v34 }
 0x36d   :  { %683 = shalt.err (!%p680_p4)
}
 0x36e   :  { %s684_s25 = scalar_lea.hbm %s916_s9, 1024 }
 0x36f   :  { %p685_p5 = scmp.ne.s32.totalorder %s916_s9, %s684_s25  ;;  %p688_p6 = scmp.lt.u32.totalorder %s684_s25, %s916_s9 }
 0x371   :  { %p690_p7 = pnand %p688_p6, %p685_p5 }
 0x373   :  { %693 = shalt.err (!%p690_p7)
}
 0x374   :  { %s700_s28 = smov 256   ;;  %s701_s1 = smov 16  }
 0x375   :  { %559 = dma.vmem_to_hbm [thread:$0]  %s554_s22, 1024, %s916_s9, [#allocation3], %s700_s28, %s700_s28, %s701_s1  }
 0x376   :  { %694 = dma.done.wait [#allocation3], 1024  }
 0x377   :  { %695 = vsyncadd [#allocation3], 4294966272 }
 0x378   :  { %563 = vsyncpa [#allocation3], 1 }

</bundles_post_ra>
